<compile_context>
chip_gen: v7x
topology: tpu7x:2x2x1
jax: 0.10.0
libtpu: 0.0.40
codegen_flags: <defaults>
</compile_context>

<pallas_src>
import functools

import jax
import jax.numpy as jnp
from jax.experimental import pallas as pl
from jax.experimental.pallas import tpu as pltpu

MARGIN = 0.3
T = 0.05  # kept for parity with the PyTorch module; unused in forward()

_POS_FILL = 2.0    # > any unit-vector gram (<= 1): never wins the positive MIN
_NEG_FILL = -2.0   # < any unit-vector gram (>= -1): never wins the negative MAX


def _round_up(x, m):
    return (x + m - 1) // m * m


def _triplet_dist_kernel(lab_col_ref, lab_row_ref, cur_ref, cur_t_ref,
                         tgt_ref, tgt_t_ref, out_ref,
                         c_pmin, c_nmax, t_pmin, t_nmax, *, margin):
    j = pl.program_id(1)

    @pl.when(j == 0)
    def _init():  # fresh running extrema for a new row tile
        c_pmin[...] = jnp.full_like(c_pmin, _POS_FILL)
        t_pmin[...] = jnp.full_like(t_pmin, _POS_FILL)
        c_nmax[...] = jnp.full_like(c_nmax, _NEG_FILL)
        t_nmax[...] = jnp.full_like(t_nmax, _NEG_FILL)

    lab_c = lab_col_ref[...]                      # (tm, 1) int32, this anchor tile
    lab_r = lab_row_ref[...]                      # (1, tn) int32, this column tile
    is_pos = lab_c == lab_r                       # broadcast compare, no transpose
    # Padded columns carry label -1 (real labels are shifted to >= 0 in the
    # wrapper): excluded from positives by the mismatch, from negatives here.
    is_neg = jnp.logical_and(jnp.logical_not(is_pos), lab_r >= 0)

    def _update(lhs_ref, rhs_ref, pmin_ref, nmax_ref):
        # k-major RHS: (tm, d_pad) @ (d_pad, tn) streams straight into the MXU.
        gram = jax.lax.dot_general(
            lhs_ref[...], rhs_ref[...], (((1,), (0,)), ((), ())),
            preferred_element_type=jnp.float32)   # (tm, tn) f32
        # Mine directly on the gram: d^2 = 2 - 2*g is monotone decreasing, so
        #   hardest positive == min gram over positives,
        #   hardest negative == max gram over negatives.
        pmin_ref[...] = jnp.minimum(
            pmin_ref[...],
            jnp.min(jnp.where(is_pos, gram, _POS_FILL), axis=1, keepdims=True))
        nmax_ref[...] = jnp.maximum(
            nmax_ref[...],
            jnp.max(jnp.where(is_neg, gram, _NEG_FILL), axis=1, keepdims=True))

    _update(cur_ref, cur_t_ref, c_pmin, c_nmax)
    _update(tgt_ref, tgt_t_ref, t_pmin, t_nmax)

    @pl.when(j == pl.num_programs(1) - 1)
    def _finalize():
        def dist(g):  # affine + clamp + sqrt only on (tm, 1) mined vectors
            return jnp.sqrt(jnp.maximum(2.0 - 2.0 * g, 1e-12))

        max_ap = jnp.maximum(dist(c_pmin[...]), dist(t_pmin[...]))
        min_an = jnp.minimum(dist(c_nmax[...]), dist(t_nmax[...]))
        # MarginRankingLoss(margin), y == 1: relu(max_ap - min_an + margin).
        hinge = jnp.maximum(max_ap - min_an + jnp.float32(margin), 0.0)  # (tm,1)
        out_ref[...] = jnp.broadcast_to(hinge, out_ref.shape)            # lane-dense


def triplet_dist_loss(current, target, labels, *, margin=MARGIN,
                      tm=256, tn=512, gram_dtype=None):
    """current, target: (N, D) float; labels: (N,) int. Returns scalar f32 loss.

    gram_dtype: optionally jnp.bfloat16 to run the gram matmuls in bf16 on the
    MXU (cast once in the wrapper; ~1e-2 absolute tolerance vs f32 reference).
    Assumes feature rows are not identically zero (as the reference's
    normalization-eps path would then differ slightly).
    """
    N, D = current.shape
    assert target.shape == (N, D)

    d_pad = _round_up(D, 128)
    store_dtype = jnp.float32 if gram_dtype is None else jnp.dtype(gram_dtype)
    gram_itemsize = jnp.dtype(store_dtype).itemsize

    # ---- tile sizes, clamped to the problem and to ~85% of this chip's VMEM ----
    tm = max(8, (min(tm, _round_up(N, 8)) // 8) * 8)
    tn = max(128, (min(tn, _round_up(N, 128)) // 128) * 128)
    try:
        vmem_cap = int(pltpu.get_tpu_info().vmem_capacity_bytes)
    except Exception:
        vmem_cap = 64 * 2**20                       # v7x per-TC VMEM (smallest)
    budget = int(0.85 * vmem_cap)

    def est(tm_, tn_):
        return (2 * 2 * tm_ * d_pad * gram_itemsize    # anchor tiles (cur+tgt), 2-buf
                + 2 * 2 * d_pad * tn_ * gram_itemsize  # k-major RHS tiles, 2-buf
                + 2 * (tm_ + 8) * 128 * 4              # label tiles (layout-padded)
                + 2 * tm_ * 128 * 4                    # output tile, 2-buf
                + 4 * tm_ * 128 * 4                    # running-extrema scratch
                + 8 * tm_ * tn_ * 4)                   # gram / mask temporaries

    while 2 * est(tm, tn) > budget and tn > 128:
        tn = max(128, ((tn // 2) // 128) * 128)
    while 2 * est(tm, tn) > budget and tm > 8:
        tm = max(8, ((tm // 2) // 8) * 8)

    n_rows = _round_up(N, tm)
    n_cols = _round_up(N, tn)
    grid = (n_rows // tm, n_cols // tn)
    vmem_limit = int(min(max(2 * est(tm, tn), 32 * 2**20), budget))

    # ---- all O(N*D) preprocessing in the wrapper (XLA), not the kernel ----
    def normalize(x):  # F.normalize(x, dim=1, p=2, eps=1e-12)
        x = x.astype(jnp.float32)
        nrm = jnp.sqrt(jnp.sum(x * x, axis=1, keepdims=True))
        return x / jnp.maximum(nrm, 1e-12)

    cur_n = normalize(current)
    tgt_n = normalize(target)

    def row_major(x):  # (n_rows, d_pad): anchor / LHS layout
        return jnp.pad(x, ((0, n_rows - N), (0, d_pad - D))).astype(store_dtype)

    def k_major(x):    # (d_pad, n_cols): MXU-friendly transposed RHS layout
        return jnp.pad(x, ((0, n_cols - N), (0, d_pad - D))).T.astype(store_dtype)

    # Shift labels so every real label is >= 0; -1 is then a safe pad sentinel.
    lab = labels.astype(jnp.int32)
    lab = lab - jnp.min(lab)
    lab_col = jnp.pad(lab, (0, n_rows - N), constant_values=-1).reshape(n_rows, 1)
    lab_row = jnp.pad(lab, (0, n_cols - N), constant_values=-1).reshape(1, n_cols)

    kernel = functools.partial(_triplet_dist_kernel, margin=float(margin))

    out = pl.pallas_call(
        kernel,
        out_shape=jax.ShapeDtypeStruct((n_rows, 128), jnp.float32),
        grid_spec=pltpu.PrefetchScalarGridSpec(
            num_scalar_prefetch=0,
            grid=grid,
            in_specs=[
                pl.BlockSpec((tm, 1), lambda i, j: (i, 0)),      # labels (column)
                pl.BlockSpec((1, tn), lambda i, j: (0, j)),      # labels (row)
                pl.BlockSpec((tm, d_pad), lambda i, j: (i, 0)),  # current anchors
                pl.BlockSpec((d_pad, tn), lambda i, j: (0, j)),  # current^T cols
                pl.BlockSpec((tm, d_pad), lambda i, j: (i, 0)),  # target anchors
                pl.BlockSpec((d_pad, tn), lambda i, j: (0, j)),  # target^T cols
            ],
            out_specs=pl.BlockSpec((tm, 128), lambda i, j: (i, 0)),
            scratch_shapes=[pltpu.VMEM((tm, 1), jnp.float32)] * 4),
        compiler_params=pltpu.CompilerParams(
            dimension_semantics=("parallel", "arbitrary"),  # row tiles -> megacore
            vmem_limit_bytes=vmem_limit),
    )(lab_col, lab_row, row_major(cur_n), k_major(cur_n),
      row_major(tgt_n), k_major(tgt_n))

    # Per-anchor hinge values live (lane-broadcast) in each row; mean over TRUE N.
    return jnp.mean(out[:N, 0])


def _reference(current, target, labels, margin=MARGIN):
    """Pure-JAX reference mirroring the PyTorch semantics, for validation."""
    def mined(x):
        x = x.astype(jnp.float32)
        xn = x / jnp.maximum(jnp.linalg.norm(x, axis=1, keepdims=True), 1e-12)
        sq = jnp.sum(xn * xn, axis=1, keepdims=True)
        d2 = sq + sq.T - 2.0 * xn @ xn.T
        dist = jnp.sqrt(jnp.maximum(d2, 1e-12))
        is_pos = labels[:, None] == labels[None, :]
        ap = jnp.max(jnp.where(is_pos, dist, -jnp.inf), axis=1)
        an = jnp.min(jnp.where(is_pos, jnp.inf, dist), axis=1)
        return ap, an

    c_ap, c_an = mined(current)
    t_ap, t_an = mined(target)
    max_ap = jnp.maximum(c_ap, t_ap)
    min_an = jnp.minimum(c_an, t_an)
    return jnp.mean(jnp.maximum(max_ap - min_an + margin, 0.0))


if __name__ == "__main__":
    key = jax.random.PRNGKey(0)

    # Case 1: tiny single-tile problem (8 anchors = 4 ids x 2 samples, D=32).
    N1, D1 = 8, 32
    k1, k2, key = jax.random.split(key, 3)
    cur1 = jax.random.normal(k1, (N1, D1), dtype=jnp.float32)
    tgt1 = jax.random.normal(k2, (N1, D1), dtype=jnp.float32)
    lab1 = jnp.array([0, 0, 1, 1, 2, 2, 3, 3], dtype=jnp.int32)
    loss1 = jax.block_until_ready(triplet_dist_loss(cur1, tgt1, lab1))
    ref1 = _reference(cur1, tgt1, lab1)
    assert jnp.allclose(loss1, ref1, atol=1e-4), (loss1, ref1)

    # Case 2: multi-tile grid (3 row tiles x 2 column tiles) with row/col padding.
    N2, D2 = 160, 24
    k3, k4, key = jax.random.split(key, 3)
    cur2 = jax.random.normal(k3, (N2, D2), dtype=jnp.float32)
    tgt2 = jax.random.normal(k4, (N2, D2), dtype=jnp.float32)
    lab2 = jnp.arange(N2, dtype=jnp.int32) % 8
    loss2 = jax.block_until_ready(
        triplet_dist_loss(cur2, tgt2, lab2, tm=64, tn=128))
    ref2 = _reference(cur2, tgt2, lab2)
    assert jnp.allclose(loss2, ref2, atol=5e-4), (loss2, ref2)

    # Case 3: optional bf16 gram fast path (cast once in wrapper, looser tol).
    loss3 = jax.block_until_ready(
        triplet_dist_loss(cur2, tgt2, lab2, tm=64, tn=128,
                          gram_dtype=jnp.bfloat16))
    assert jnp.allclose(loss3, ref2, atol=5e-2), (loss3, ref2)

    print("KERNEL_OK")
</pallas_src>

<mosaic_0001>
module attributes {stable_mosaic.version = 11 : i64} {
  func.func @_triplet_dist_kernel(%arg0: i32, %arg1: i32, %arg2: memref<8x1xi32, #tpu.memory_space<vmem>>, %arg3: memref<1x128xi32, #tpu.memory_space<vmem>>, %arg4: memref<8x128xf32, #tpu.memory_space<vmem>>, %arg5: memref<128x128xf32, #tpu.memory_space<vmem>>, %arg6: memref<8x128xf32, #tpu.memory_space<vmem>>, %arg7: memref<128x128xf32, #tpu.memory_space<vmem>>, %arg8: memref<8x128xf32, #tpu.memory_space<vmem>>, %arg9: memref<8x1xf32, #tpu.memory_space<vmem>>, %arg10: memref<8x1xf32, #tpu.memory_space<vmem>>, %arg11: memref<8x1xf32, #tpu.memory_space<vmem>>, %arg12: memref<8x1xf32, #tpu.memory_space<vmem>>) attributes {dimension_semantics = [#tpu.dimension_semantics<parallel>, #tpu.dimension_semantics<arbitrary>], iteration_bounds = array<i64: 1, 1>, scalar_prefetch = 0 : i64, scratch_operands = 4 : i64, tpu.core_type = #tpu.core_type<tc>, window_params = [{transform_indices = @transform_0, window_bounds = array<i64: 8, 1>}, {transform_indices = @transform_1, window_bounds = array<i64: 1, 128>}, {transform_indices = @transform_2, window_bounds = array<i64: 8, 128>}, {transform_indices = @transform_3, window_bounds = array<i64: 128, 128>}, {transform_indices = @transform_4, window_bounds = array<i64: 8, 128>}, {transform_indices = @transform_5, window_bounds = array<i64: 128, 128>}, {transform_indices = @transform_6, window_bounds = array<i64: 8, 128>}]} {
    %c0_i32 = arith.constant 0 : i32
    %0 = arith.cmpi eq, %arg1, %c0_i32 : i32
    %1 = arith.extui %0 : i1 to i32
    %c0_i32_0 = arith.constant 0 : i32
    %2 = arith.cmpi ne, %1, %c0_i32_0 : i32
    scf.if %2 {
      %cst_41 = arith.constant 2.000000e+00 : f32
      %50 = vector.broadcast %cst_41 : f32 to vector<8x1xf32>
      %c0_42 = arith.constant 0 : index
      %c0_43 = arith.constant 0 : index
      %51 = vector.load %arg9[%c0_42, %c0_43] : memref<8x1xf32, #tpu.memory_space<vmem>>, vector<8x1xf32>
      tpu.vector_store %arg9[%c0_42, %c0_43], %50 {strides = array<i32>} : memref<8x1xf32, #tpu.memory_space<vmem>>, vector<8x1xf32>,
      %cst_44 = arith.constant 2.000000e+00 : f32
      %52 = vector.broadcast %cst_44 : f32 to vector<8x1xf32>
      %c0_45 = arith.constant 0 : index
      %c0_46 = arith.constant 0 : index
      %53 = vector.load %arg11[%c0_45, %c0_46] : memref<8x1xf32, #tpu.memory_space<vmem>>, vector<8x1xf32>
      tpu.vector_store %arg11[%c0_45, %c0_46], %52 {strides = array<i32>} : memref<8x1xf32, #tpu.memory_space<vmem>>, vector<8x1xf32>,
      %cst_47 = arith.constant -2.000000e+00 : f32
      %54 = vector.broadcast %cst_47 : f32 to vector<8x1xf32>
      %c0_48 = arith.constant 0 : index
      %c0_49 = arith.constant 0 : index
      %55 = vector.load %arg10[%c0_48, %c0_49] : memref<8x1xf32, #tpu.memory_space<vmem>>, vector<8x1xf32>
      tpu.vector_store %arg10[%c0_48, %c0_49], %54 {strides = array<i32>} : memref<8x1xf32, #tpu.memory_space<vmem>>, vector<8x1xf32>,
      %cst_50 = arith.constant -2.000000e+00 : f32
      %56 = vector.broadcast %cst_50 : f32 to vector<8x1xf32>
      %c0_51 = arith.constant 0 : index
      %c0_52 = arith.constant 0 : index
      %57 = vector.load %arg12[%c0_51, %c0_52] : memref<8x1xf32, #tpu.memory_space<vmem>>, vector<8x1xf32>
      tpu.vector_store %arg12[%c0_51, %c0_52], %56 {strides = array<i32>} : memref<8x1xf32, #tpu.memory_space<vmem>>, vector<8x1xf32>,
    } else {
    }
    %c0 = arith.constant 0 : index
    %c0_1 = arith.constant 0 : index
    %3 = vector.load %arg2[%c0, %c0_1] : memref<8x1xi32, #tpu.memory_space<vmem>>, vector<8x1xi32>
    %c0_2 = arith.constant 0 : index
    %c0_3 = arith.constant 0 : index
    %4 = vector.load %arg3[%c0_2, %c0_3] : memref<1x128xi32, #tpu.memory_space<vmem>>, vector<1x128xi32>
    %5 = vector.broadcast %3 : vector<8x1xi32> to vector<8x128xi32>
    %6 = vector.broadcast %4 : vector<1x128xi32> to vector<8x128xi32>
    %7 = arith.cmpi eq, %5, %6 : vector<8x128xi32>
    %cst = arith.constant dense<true> : vector<8x128xi1>
    %8 = arith.xori %7, %cst : vector<8x128xi1>
    %c0_i32_4 = arith.constant 0 : i32
    %9 = vector.broadcast %c0_i32_4 : i32 to vector<1x128xi32>
    %10 = arith.cmpi sge, %4, %9 : vector<1x128xi32>
    %11 = vector.broadcast %10 : vector<1x128xi1> to vector<8x128xi1>
    %12 = arith.andi %8, %11 : vector<8x128xi1>
    %c0_5 = arith.constant 0 : index
    %c0_6 = arith.constant 0 : index
    %13 = vector.load %arg4[%c0_5, %c0_6] : memref<8x128xf32, #tpu.memory_space<vmem>>, vector<8x128xf32>
    %c0_7 = arith.constant 0 : index
    %c0_8 = arith.constant 0 : index
    %14 = vector.load %arg5[%c0_7, %c0_8] : memref<128x128xf32, #tpu.memory_space<vmem>>, vector<128x128xf32>
    %cst_9 = arith.constant dense<0.000000e+00> : vector<8x128xf32>
    %15 = tpu.matmul %13, %14, %cst_9 {dimension_numbers = #tpu.dot_dimension_numbers<[1], [0], [0], [1], [0, 0, 1, 1], [], []>} : vector<8x128xf32>, vector<128x128xf32>, vector<8x128xf32> -> vector<8x128xf32>
    %c0_10 = arith.constant 0 : index
    %c0_11 = arith.constant 0 : index
    %16 = vector.load %arg9[%c0_10, %c0_11] : memref<8x1xf32, #tpu.memory_space<vmem>>, vector<8x1xf32>
    %cst_12 = arith.constant 2.000000e+00 : f32
    %17 = vector.broadcast %cst_12 : f32 to vector<8x128xf32>
    %18 = arith.select %7, %15, %17 : vector<8x128xi1>, vector<8x128xf32>
    %cst_13 = arith.constant dense<0x7F800000> : vector<8xf32>
    %19 = vector.multi_reduction <minimumf>, %18, %cst_13 [1] : vector<8x128xf32> to vector<8xf32>
    %20 = vector.shape_cast %19 : vector<8xf32> to vector<8x1xf32>
    %21 = arith.minimumf %16, %20 : vector<8x1xf32>
    %c0_14 = arith.constant 0 : index
    %c0_15 = arith.constant 0 : index
    %22 = vector.load %arg9[%c0_14, %c0_15] : memref<8x1xf32, #tpu.memory_space<vmem>>, vector<8x1xf32>
    tpu.vector_store %arg9[%c0_14, %c0_15], %21 {strides = array<i32>} : memref<8x1xf32, #tpu.memory_space<vmem>>, vector<8x1xf32>,
    %c0_16 = arith.constant 0 : index
    %c0_17 = arith.constant 0 : index
    %23 = vector.load %arg10[%c0_16, %c0_17] : memref<8x1xf32, #tpu.memory_space<vmem>>, vector<8x1xf32>
    %cst_18 = arith.constant -2.000000e+00 : f32
    %24 = vector.broadcast %cst_18 : f32 to vector<8x128xf32>
    %25 = arith.select %12, %15, %24 : vector<8x128xi1>, vector<8x128xf32>
    %cst_19 = arith.constant dense<0xFF800000> : vector<8xf32>
    %26 = vector.multi_reduction <maximumf>, %25, %cst_19 [1] : vector<8x128xf32> to vector<8xf32>
    %27 = vector.shape_cast %26 : vector<8xf32> to vector<8x1xf32>
    %28 = arith.maximumf %23, %27 : vector<8x1xf32>
    %c0_20 = arith.constant 0 : index
    %c0_21 = arith.constant 0 : index
    %29 = vector.load %arg10[%c0_20, %c0_21] : memref<8x1xf32, #tpu.memory_space<vmem>>, vector<8x1xf32>
    tpu.vector_store %arg10[%c0_20, %c0_21], %28 {strides = array<i32>} : memref<8x1xf32, #tpu.memory_space<vmem>>, vector<8x1xf32>,
    %c0_22 = arith.constant 0 : index
    %c0_23 = arith.constant 0 : index
    %30 = vector.load %arg6[%c0_22, %c0_23] : memref<8x128xf32, #tpu.memory_space<vmem>>, vector<8x128xf32>
    %c0_24 = arith.constant 0 : index
    %c0_25 = arith.constant 0 : index
    %31 = vector.load %arg7[%c0_24, %c0_25] : memref<128x128xf32, #tpu.memory_space<vmem>>, vector<128x128xf32>
    %cst_26 = arith.constant dense<0.000000e+00> : vector<8x128xf32>
    %32 = tpu.matmul %30, %31, %cst_26 {dimension_numbers = #tpu.dot_dimension_numbers<[1], [0], [0], [1], [0, 0, 1, 1], [], []>} : vector<8x128xf32>, vector<128x128xf32>, vector<8x128xf32> -> vector<8x128xf32>
    %c0_27 = arith.constant 0 : index
    %c0_28 = arith.constant 0 : index
    %33 = vector.load %arg11[%c0_27, %c0_28] : memref<8x1xf32, #tpu.memory_space<vmem>>, vector<8x1xf32>
    %cst_29 = arith.constant 2.000000e+00 : f32
    %34 = vector.broadcast %cst_29 : f32 to vector<8x128xf32>
    %35 = arith.select %7, %32, %34 : vector<8x128xi1>, vector<8x128xf32>
    %cst_30 = arith.constant dense<0x7F800000> : vector<8xf32>
    %36 = vector.multi_reduction <minimumf>, %35, %cst_30 [1] : vector<8x128xf32> to vector<8xf32>
    %37 = vector.shape_cast %36 : vector<8xf32> to vector<8x1xf32>
    %38 = arith.minimumf %33, %37 : vector<8x1xf32>
    %c0_31 = arith.constant 0 : index
    %c0_32 = arith.constant 0 : index
    %39 = vector.load %arg11[%c0_31, %c0_32] : memref<8x1xf32, #tpu.memory_space<vmem>>, vector<8x1xf32>
    tpu.vector_store %arg11[%c0_31, %c0_32], %38 {strides = array<i32>} : memref<8x1xf32, #tpu.memory_space<vmem>>, vector<8x1xf32>,
    %c0_33 = arith.constant 0 : index
    %c0_34 = arith.constant 0 : index
    %40 = vector.load %arg12[%c0_33, %c0_34] : memref<8x1xf32, #tpu.memory_space<vmem>>, vector<8x1xf32>
    %cst_35 = arith.constant -2.000000e+00 : f32
    %41 = vector.broadcast %cst_35 : f32 to vector<8x128xf32>
    %42 = arith.select %12, %32, %41 : vector<8x128xi1>, vector<8x128xf32>
    %cst_36 = arith.constant dense<0xFF800000> : vector<8xf32>
    %43 = vector.multi_reduction <maximumf>, %42, %cst_36 [1] : vector<8x128xf32> to vector<8xf32>
    %44 = vector.shape_cast %43 : vector<8xf32> to vector<8x1xf32>
    %45 = arith.maximumf %40, %44 : vector<8x1xf32>
    %c0_37 = arith.constant 0 : index
    %c0_38 = arith.constant 0 : index
    %46 = vector.load %arg12[%c0_37, %c0_38] : memref<8x1xf32, #tpu.memory_space<vmem>>, vector<8x1xf32>
    tpu.vector_store %arg12[%c0_37, %c0_38], %45 {strides = array<i32>} : memref<8x1xf32, #tpu.memory_space<vmem>>, vector<8x1xf32>,
    %c0_i32_39 = arith.constant 0 : i32
    %47 = arith.cmpi eq, %arg1, %c0_i32_39 : i32
    %48 = arith.extui %47 : i1 to i32
    %c0_i32_40 = arith.constant 0 : i32
    %49 = arith.cmpi ne, %48, %c0_i32_40 : i32
    scf.if %49 {
      %c0_41 = arith.constant 0 : index
      %c0_42 = arith.constant 0 : index
      %50 = vector.load %arg9[%c0_41, %c0_42] : memref<8x1xf32, #tpu.memory_space<vmem>>, vector<8x1xf32>
      %cst_43 = arith.constant 2.000000e+00 : f32
      %51 = vector.broadcast %cst_43 : f32 to vector<8x1xf32>
      %52 = arith.mulf %51, %50 : vector<8x1xf32>
      %cst_44 = arith.constant 2.000000e+00 : f32
      %53 = vector.broadcast %cst_44 : f32 to vector<8x1xf32>
      %54 = arith.subf %53, %52 : vector<8x1xf32>
      %cst_45 = arith.constant 9.99999996E-13 : f32
      %55 = vector.broadcast %cst_45 : f32 to vector<8x1xf32>
      %56 = arith.maximumf %54, %55 : vector<8x1xf32>
      %57 = math.sqrt %56 : vector<8x1xf32>
      %c0_46 = arith.constant 0 : index
      %c0_47 = arith.constant 0 : index
      %58 = vector.load %arg11[%c0_46, %c0_47] : memref<8x1xf32, #tpu.memory_space<vmem>>, vector<8x1xf32>
      %cst_48 = arith.constant 2.000000e+00 : f32
      %59 = vector.broadcast %cst_48 : f32 to vector<8x1xf32>
      %60 = arith.mulf %59, %58 : vector<8x1xf32>
      %cst_49 = arith.constant 2.000000e+00 : f32
      %61 = vector.broadcast %cst_49 : f32 to vector<8x1xf32>
      %62 = arith.subf %61, %60 : vector<8x1xf32>
      %cst_50 = arith.constant 9.99999996E-13 : f32
      %63 = vector.broadcast %cst_50 : f32 to vector<8x1xf32>
      %64 = arith.maximumf %62, %63 : vector<8x1xf32>
      %65 = math.sqrt %64 : vector<8x1xf32>
      %66 = arith.maximumf %57, %65 : vector<8x1xf32>
      %c0_51 = arith.constant 0 : index
      %c0_52 = arith.constant 0 : index
      %67 = vector.load %arg10[%c0_51, %c0_52] : memref<8x1xf32, #tpu.memory_space<vmem>>, vector<8x1xf32>
      %cst_53 = arith.constant 2.000000e+00 : f32
      %68 = vector.broadcast %cst_53 : f32 to vector<8x1xf32>
      %69 = arith.mulf %68, %67 : vector<8x1xf32>
      %cst_54 = arith.constant 2.000000e+00 : f32
      %70 = vector.broadcast %cst_54 : f32 to vector<8x1xf32>
      %71 = arith.subf %70, %69 : vector<8x1xf32>
      %cst_55 = arith.constant 9.99999996E-13 : f32
      %72 = vector.broadcast %cst_55 : f32 to vector<8x1xf32>
      %73 = arith.maximumf %71, %72 : vector<8x1xf32>
      %74 = math.sqrt %73 : vector<8x1xf32>
      %c0_56 = arith.constant 0 : index
      %c0_57 = arith.constant 0 : index
      %75 = vector.load %arg12[%c0_56, %c0_57] : memref<8x1xf32, #tpu.memory_space<vmem>>, vector<8x1xf32>
      %cst_58 = arith.constant 2.000000e+00 : f32
      %76 = vector.broadcast %cst_58 : f32 to vector<8x1xf32>
      %77 = arith.mulf %76, %75 : vector<8x1xf32>
      %cst_59 = arith.constant 2.000000e+00 : f32
      %78 = vector.broadcast %cst_59 : f32 to vector<8x1xf32>
      %79 = arith.subf %78, %77 : vector<8x1xf32>
      %cst_60 = arith.constant 9.99999996E-13 : f32
      %80 = vector.broadcast %cst_60 : f32 to vector<8x1xf32>
      %81 = arith.maximumf %79, %80 : vector<8x1xf32>
      %82 = math.sqrt %81 : vector<8x1xf32>
      %83 = arith.minimumf %74, %82 : vector<8x1xf32>
      %84 = arith.subf %66, %83 : vector<8x1xf32>
      %cst_61 = arith.constant 3.000000e-01 : f32
      %85 = vector.broadcast %cst_61 : f32 to vector<8x1xf32>
      %86 = arith.addf %84, %85 : vector<8x1xf32>
      %cst_62 = arith.constant 0.000000e+00 : f32
      %87 = vector.broadcast %cst_62 : f32 to vector<8x1xf32>
      %88 = arith.maximumf %86, %87 : vector<8x1xf32>
      %89 = vector.shape_cast %88 : vector<8x1xf32> to vector<8x1xf32>
      %90 = vector.broadcast %89 : vector<8x1xf32> to vector<8x128xf32>
      %c0_63 = arith.constant 0 : index
      %c0_64 = arith.constant 0 : index
      %91 = vector.load %arg8[%c0_63, %c0_64] : memref<8x128xf32, #tpu.memory_space<vmem>>, vector<8x128xf32>
      tpu.vector_store %arg8[%c0_63, %c0_64], %90 {strides = array<i32>} : memref<8x128xf32, #tpu.memory_space<vmem>>, vector<8x128xf32>,
    } else {
    }
    return
  }
  func.func @transform_0(%arg0: i32, %arg1: i32) -> (i32, i32) {
    %c0_i32 = arith.constant 0 : i32
    %c0_i32_0 = arith.constant 0 : i32
    return %arg0, %c0_i32 : i32, i32
  }
  func.func @transform_1(%arg0: i32, %arg1: i32) -> (i32, i32) {
    %c0_i32 = arith.constant 0 : i32
    %c0_i32_0 = arith.constant 0 : i32
    return %c0_i32, %arg1 : i32, i32
  }
  func.func @transform_2(%arg0: i32, %arg1: i32) -> (i32, i32) {
    %c0_i32 = arith.constant 0 : i32
    %c0_i32_0 = arith.constant 0 : i32
    return %arg0, %c0_i32 : i32, i32
  }
  func.func @transform_3(%arg0: i32, %arg1: i32) -> (i32, i32) {
    %c0_i32 = arith.constant 0 : i32
    %c0_i32_0 = arith.constant 0 : i32
    return %c0_i32, %arg1 : i32, i32
  }
  func.func @transform_4(%arg0: i32, %arg1: i32) -> (i32, i32) {
    %c0_i32 = arith.constant 0 : i32
    %c0_i32_0 = arith.constant 0 : i32
    return %arg0, %c0_i32 : i32, i32
  }
  func.func @transform_5(%arg0: i32, %arg1: i32) -> (i32, i32) {
    %c0_i32 = arith.constant 0 : i32
    %c0_i32_0 = arith.constant 0 : i32
    return %c0_i32, %arg1 : i32, i32
  }
  func.func @transform_6(%arg0: i32, %arg1: i32) -> (i32, i32) {
    %c0_i32 = arith.constant 0 : i32
    %c0_i32_0 = arith.constant 0 : i32
    return %arg0, %c0_i32 : i32, i32
  }
}

</mosaic_0001>

<bundles_post_ra>
// kernel: tpu_custom_call.1
= control target key start
LH: loop header
LB: loop body
LE: loop exit
PB: predicated region body
PF: predicated region fallthrough
CT: control target
= control target key end

     0   :  { %11 = vsyncpa [#allocation7], 0  ;;  %s771_s0 = inlined_call_operand.vmem [shape: s32[8,1], index: 0, kind: input, shape index: {}]   ;;  %s772_s1 = inlined_call_operand.hbm [shape: s32[1,128], index: 1, kind: input, shape index: {}]   ;;  %s773_s2 = inlined_call_operand.vmem [shape: f32[8,128], index: 2, kind: input, shape index: {}]   ;;  %s774_s3 = inlined_call_operand.hbm [shape: f32[128,128], index: 3, kind: input, shape index: {}]   ;;  %s775_s4 = inlined_call_operand.vmem [shape: f32[8,128], index: 4, kind: input, shape index: {}]   ;;  %s776_s5 = inlined_call_operand.hbm [shape: f32[128,128], index: 5, kind: input, shape index: {}]   ;;  %s777_s6 = inlined_call_operand.hbm [shape: f32[8,128], index: 6, kind: output, shape index: {}]  }
   0x1   :  { %12 = vsyncpa [#allocation10], 0 }
   0x2   :  { %13 = vsyncpa [#allocation8], 0  ;;  %s633_s21 = smov [#allocation9]   ;;  %s539_s25 = scalar_lea.hbm %s774_s3, 2048 }
   0x3   :  { %s33_s22 = sshll.u32 %s633_s21, 4  ;;  %p540_p0 = scmp.ne.s32.totalorder %s774_s3, %s539_s25  ;;  %s34_s22 = int_to_ptr.vmem [resolvable:$true] %s33_s22 }
   0x4   :  { %p543_p1 = scmp.lt.u32.totalorder %s539_s25, %s774_s3 }
   0x6   :  { %p545_p2 = pnand %p543_p1, %p540_p0 }
   0x8   :  { %548 = shalt.err (!%p545_p2)
}
   0x9   :  { %s549_s30 = scalar_lea.vmem %s34_s22, 2048  ;;  %p554_p4 = scmp.lt.s32.totalorder %s34_s22, %s34_s22 }
   0xa   :  { %p550_p3 = scmp.ne.s32.totalorder %s34_s22, %s549_s30  ;;  %p555_p5 = scmp.lt.s32.totalorder %s549_s30, %s549_s30 }
   0xc   :  { %p556_p6 = por %p555_p5, %p554_p4 }
   0xe   :  { %p557_p7 = pnand %p556_p6, %p550_p3 }
  0x10   :  { %560 = shalt.err (!%p557_p7)
}
  0x11   :  { %s634_s7 = smov 128   ;;  %s635_s8 = smov 8  }
  0x12   :  { %39 = dma.hbm_to_vmem [thread:$0]  %s774_s3, 2048, %s34_s22, [#allocation10], %s634_s7, %s634_s7, %s635_s8  }
  0x13   :  { %s636_s11 = smov [#allocation6]   ;;  %s637_s13 = smov [#allocation11]  }
  0x14   :  { %s22_s12 = sshll.u32 %s636_s11, 4  ;;  %s47_s14 = sshll.u32 %s637_s13, 4  ;;  %s23_s12 = int_to_ptr.vmem [resolvable:$true] %s22_s12  ;;  %s48_s14 = int_to_ptr.vmem [resolvable:$true] %s47_s14 }
  0x15   :  { %s561_s17 = scalar_lea.hbm %s772_s1, 16 }
  0x16   :  { %p562_p8 = scmp.ne.s32.totalorder %s772_s1, %s561_s17  ;;  %p565_p9 = scmp.lt.u32.totalorder %s561_s17, %s772_s1 }
  0x18   :  { %p567_p10 = pnand %p565_p9, %p562_p8 }
  0x1a   :  { %570 = shalt.err (!%p567_p10)
}
  0x1b   :  { %s571_s3 = scalar_lea.vmem %s23_s12, 16  ;;  %s575_s22 = scalar_lea.vmem %s23_s12, 32 }
  0x1c   :  { %p572_p11 = scmp.ne.s32.totalorder %s23_s12, %s571_s3  ;;  %p576_p12 = scmp.lt.s32.totalorder %s23_s12, %s23_s12 }
  0x1d   :  { %p577_p13 = scmp.lt.s32.totalorder %s575_s22, %s571_s3 }
  0x1f   :  { %p578_p0 = por %p577_p13, %p576_p12 }
  0x21   :  { %p579_p1 = pnand %p578_p0, %p572_p11 }
  0x23   :  { %582 = shalt.err (!%p579_p1)
}
  0x24   :  { %25 = dma.hbm_to_vmem [thread:$0]  %s772_s1, 16, %s23_s12, [#allocation7]  }
  0x25   :  { %s583_s27 = scalar_lea.hbm %s776_s5, 2048 }
  0x26   :  { %p584_p2 = scmp.ne.s32.totalorder %s776_s5, %s583_s27  ;;  %p587_p3 = scmp.lt.u32.totalorder %s583_s27, %s776_s5 }
  0x28   :  { %p589_p4 = pnand %p587_p3, %p584_p2 }
  0x2a   :  { %592 = shalt.err (!%p589_p4)
}
  0x2b   :  { %s593_s10 = scalar_lea.vmem %s48_s14, 2048  ;;  %p598_p6 = scmp.lt.s32.totalorder %s48_s14, %s48_s14 }
  0x2c   :  { %p594_p5 = scmp.ne.s32.totalorder %s48_s14, %s593_s10  ;;  %p599_p7 = scmp.lt.s32.totalorder %s593_s10, %s593_s10 }
  0x2e   :  { %p600_p8 = por %p599_p7, %p598_p6 }
  0x30   :  { %p601_p9 = pnand %p600_p8, %p594_p5 }
  0x32   :  { %604 = shalt.err (!%p601_p9)
}
  0x33   :  { %53 = dma.hbm_to_vmem [thread:$0]  %s776_s5, 2048, %s48_s14, [#allocation10], %s634_s7, %s634_s7, %s635_s8  }
  0x34   :  { %627 = dma.done.wait [#allocation7], 16  }
  0x35   :  { %628 = vsyncadd [#allocation7], 4294967280 }
  0x36   :  { %629 = dma.done.wait [#allocation10], 4096  }
  0x37   :  { %630 = vsyncadd [#allocation10], 4294963200  ;;  %v638_v0 = vmov 0.0|0.0   ;;  %vm639_vm0 = vmmov 0   ;;  %v640_v1 = vmov 0.0   ;;  %v641_v2 = vmov 0  }
  0x38   :  { %468 = vmatprep.subr.bf16.mxu0 %v638_v0  ;;  %492 = vmatprep.subr.bf16.mxu1 %v638_v0  ;;  %v92_v3 = vld [vmem:[#allocation9] sm:$0xff]  ;;  %v93_v4 = vld [vmem:[#allocation9 + $0x8] sm:$0xff]  ;;  %v94_v8 = vld [vmem:[#allocation9 + $0x10] sm:$0xff]  ;;  %vm67_vm1 = vcmask 7168   ;;  %v642_v54 = vmov 2.0   ;;  %v77_v55 = vlaneseq  ;;  %vm643_vm4 = vmmov 1  }
  0x39   :  { %430 = vmatprep.mubr.msk.f32.mxu0 %vm639_vm0, %v640_v1  ;;  %465 = vmatprep.mubr.msk.f32.mxu1 %vm639_vm0, %v640_v1  ;;  %v192_v5 = vld [vmem:[#allocation11] sm:$0xff]  ;;  %v469_v6 = vpack.c.bf16 %v93_v4, %v92_v3  ;;  %v193_v7 = vld [vmem:[#allocation11 + $0x8] sm:$0xff]  ;;  %v95_v9 = vld [vmem:[#allocation9 + $0x18] sm:$0xff]  ;;  %68 = vst.msk [vmem:[#allocation2] sm:$0xff] %vm67_vm1, %v642_v54 }
  0x3a   :  { %529 = vset.pattern.permute.xlu0 %v641_v2  ;;  %530 = vset.pattern.permute.xlu1 %v641_v2  ;;  %v493_v10 = vpack.c.bf16 %v193_v7, %v192_v5  ;;  %v194_v11 = vld [vmem:[#allocation11 + $0x10] sm:$0xff]  ;;  %v195_v12 = vld [vmem:[#allocation11 + $0x18] sm:$0xff]  ;;  %v472_v13 = vpack.c.bf16 %v95_v9, %v94_v8  ;;  %v96_v15 = vld [vmem:[#allocation9 + $0x20] sm:$0xff]  ;;  %69 = vst.msk [vmem:[#allocation4] sm:$0xff] %vm67_vm1, %v642_v54  ;;  %v78_v56 = vshrl.u32 %v77_v55, 7  ;;  %v644_v8 = vmov -2.0  }
  0x3b   :  { %470 = vmatpush3.bf16.msra.mxu0 %v469_v6  ;;  %v496_v14 = vpack.c.bf16 %v195_v12, %v194_v11  ;;  %v97_v16 = vld [vmem:[#allocation9 + $0x28] sm:$0xff]  ;;  %v196_v17 = vld [vmem:[#allocation11 + $0x20] sm:$0xff]  ;;  %v98_v21 = vld [vmem:[#allocation9 + $0x30] sm:$0xff]  ;;  %70 = vst.msk [vmem:[#allocation3] sm:$0xff] %vm67_vm1, %v644_v8 }
  0x3c   :  { %494 = vmatpush3.bf16.msra.mxu1 %v493_v10  ;;  %471 = vmatprep.subr.bf16.mxu0 %v638_v0  ;;  %v197_v18 = vld [vmem:[#allocation11 + $0x28] sm:$0xff]  ;;  %v475_v19 = vpack.c.bf16 %v97_v16, %v96_v15  ;;  %v99_v22 = vld [vmem:[#allocation9 + $0x38] sm:$0xff]  ;;  %v198_v23 = vld [vmem:[#allocation11 + $0x30] sm:$0xff]  ;;  %v79_v58 = vsub.s32 0, %v78_v56  ;;  %71 = vst.msk [vmem:[#allocation5] sm:$0xff] %vm67_vm1, %v644_v8 }
  0x3d   :  { %495 = vmatprep.subr.bf16.mxu1 %v638_v0  ;;  %v499_v20 = vpack.c.bf16 %v197_v18, %v196_v17  ;;  %v199_v24 = vld [vmem:[#allocation11 + $0x38] sm:$0xff]  ;;  %v478_v25 = vpack.c.bf16 %v99_v22, %v98_v21  ;;  %v72_v26 = vld [vmem:[%s771_s0] sm:$0xff]  ;;  %v100_v28 = vld [vmem:[#allocation9 + $0x40] sm:$0xff] }
  0x3e   :  { %v502_v27 = vpack.c.bf16 %v199_v24, %v198_v23  ;;  %v101_v29 = vld [vmem:[#allocation9 + $0x48] sm:$0xff]  ;;  %v200_v30 = vld [vmem:[#allocation11 + $0x40] sm:$0xff]  ;;  %75 = vperm.xlu0 %529, %v72_v26   ;;  %v102_v34 = vld [vmem:[#allocation9 + $0x50] sm:$0xff] }
  0x3f   :  { %473 = vmatpush3.bf16.msra.mxu0 %v472_v13  ;;  %v201_v31 = vld [vmem:[#allocation11 + $0x48] sm:$0xff]  ;;  %v481_v32 = vpack.c.bf16 %v101_v29, %v100_v28  ;;  %v103_v35 = vld [vmem:[#allocation9 + $0x58] sm:$0xff]  ;;  %v202_v36 = vld [vmem:[#allocation11 + $0x50] sm:$0xff] }
  0x40   :  { %497 = vmatpush3.bf16.msra.mxu1 %v496_v14  ;;  %474 = vmatprep.subr.bf16.mxu0 %v638_v0  ;;  %v505_v33 = vpack.c.bf16 %v201_v31, %v200_v30  ;;  %v203_v37 = vld [vmem:[#allocation11 + $0x58] sm:$0xff]  ;;  %v484_v38 = vpack.c.bf16 %v103_v35, %v102_v34  ;;  %v104_v40 = vld [vmem:[#allocation9 + $0x60] sm:$0xff]  ;;  %v105_v41 = vld [vmem:[#allocation9 + $0x68] sm:$0xff] }
  0x41   :  { %498 = vmatprep.subr.bf16.mxu1 %v638_v0  ;;  %v508_v39 = vpack.c.bf16 %v203_v37, %v202_v36  ;;  %v204_v42 = vld [vmem:[#allocation11 + $0x60] sm:$0xff]  ;;  %v205_v43 = vld [vmem:[#allocation11 + $0x68] sm:$0xff]  ;;  %v487_v44 = vpack.c.bf16 %v105_v41, %v104_v40  ;;  %v106_v46 = vld [vmem:[#allocation9 + $0x70] sm:$0xff] }
  0x42   :  { %v511_v45 = vpack.c.bf16 %v205_v43, %v204_v42  ;;  %v107_v47 = vld [vmem:[#allocation9 + $0x78] sm:$0xff]  ;;  %v206_v48 = vld [vmem:[#allocation11 + $0x70] sm:$0xff]  ;;  %v185_v9 = vld [vmem:[#allocation3] sm:$0xff] }
  0x43   :  { %476 = vmatpush3.bf16.msra.mxu0 %v475_v19  ;;  %v207_v49 = vld [vmem:[#allocation11 + $0x78] sm:$0xff]  ;;  %v490_v50 = vpack.c.bf16 %v107_v47, %v106_v46  ;;  %v91_v52 = vld [vmem:[%s773_s2] sm:$0xff]  ;;  %s645_s2 = smov [#allocation12]  }
  0x44   :  { %500 = vmatpush3.bf16.msra.mxu1 %v499_v20  ;;  %477 = vmatprep.subr.bf16.mxu0 %v638_v0  ;;  %v514_v51 = vpack.c.bf16 %v207_v49, %v206_v48  ;;  %v191_v53 = vld [vmem:[%s775_s4] sm:$0xff]  ;;  %v73_v57 = vld [vmem:[#allocation6] sm:$0x1]  ;;  %v284_v17 = vld [vmem:[#allocation5] sm:$0xff]  ;;  %s354_s4 = sshll.u32 %s645_s2, 4  ;;  %s355_s4 = int_to_ptr.vmem [resolvable:$true] %s354_s4 }
  0x45   :  { %501 = vmatprep.subr.bf16.mxu1 %v638_v0  ;;  %vm83_vm2 = vcmp.ge.s32.totalorder %v73_v57, 0  ;;  %v80_v59 = vrot.slane %v73_v57, %v79_v58  ;;  %v278_v14 = vld [vmem:[#allocation4] sm:$0xff]  ;;  %s605_s14 = scalar_lea.vmem %s355_s4, 128  ;;  %p610_p11 = scmp.lt.s32.totalorder %s355_s4, %s355_s4 }
  0x46   :  { %v84_v60 = vsel %vm83_vm2, 1, %v641_v2  ;;  %v178_v2 = vld [vmem:[#allocation2] sm:$0xff]  ;;  %p606_p10 = scmp.ne.s32.totalorder %s355_s4, %s605_s14  ;;  %p611_p12 = scmp.lt.s32.totalorder %s605_s14, %s605_s14 }
  0x47   :  { %479 = vmatpush3.bf16.msra.mxu0 %v478_v25  ;;  %v88_v62 = vrot.slane %v84_v60, %v79_v58 }
  0x48   :  { %503 = vmatpush3.bf16.msra.mxu1 %v502_v27  ;;  %480 = vmatprep.subr.bf16.mxu0 %v638_v0  ;;  %p612_p13 = por %p611_p12, %p610_p11 }
  0x49   :  { %504 = vmatprep.subr.bf16.mxu1 %v638_v0  ;;  %vm89_vm6 = vcmp.eq.s32.totalorder %v88_v62, 1 }
  0x4a   :  { %p613_p0 = pnand %p612_p13, %p606_p10 }
  0x4b   :  { %482 = vmatpush3.bf16.msra.mxu0 %v481_v32 }
  0x4c   :  { %506 = vmatpush3.bf16.msra.mxu1 %v505_v33  ;;  %483 = vmatprep.subr.bf16.mxu0 %v638_v0 }
  0x4d   :  { %507 = vmatprep.subr.bf16.mxu1 %v638_v0 }
  0x4f   :  { %485 = vmatpush3.bf16.msra.mxu0 %v484_v38 }
  0x50   :  { %509 = vmatpush3.bf16.msra.mxu1 %v508_v39  ;;  %486 = vmatprep.subr.bf16.mxu0 %v638_v0 }
  0x51   :  { %510 = vmatprep.subr.bf16.mxu1 %v638_v0 }
  0x53   :  { %488 = vmatpush3.bf16.msra.mxu0 %v487_v44 }
  0x54   :  { %512 = vmatpush3.bf16.msra.mxu1 %v511_v45  ;;  %489 = vmatprep.subr.bf16.mxu0 %v638_v0 }
  0x55   :  { %513 = vmatprep.subr.bf16.mxu1 %v638_v0 }
  0x57   :  { %491 = vmatpush3.bf16.msra.mxu0 %v490_v50 }
  0x58   :  { %515 = vmatpush3.bf16.msra.mxu1 %v514_v51 }
  0x5a   :  { %431 = vmatmul.mubr.f32.vlgmr.msra.gmra.mrb[0].mxu0 %v91_v52 }
  0x5b   :  { %466 = vmatmul.mubr.f32.vlgmr.msra.gmra.mrb[0].mxu1 %v191_v53 }
  0xbd   :  { %v76_v61 = vpop.permute.xlu0 %75 }
  0xbe   :  { %vm81_vm3 = vcmp.eq.s32.totalorder %v76_v61, %v80_v59 }
  0xbf   :  { %vm82_vm5 = vmxor %vm81_vm3, %vm643_vm4 }
  0xc0   :  { %vm90_vm7 = vmand %vm82_vm5, %vm89_vm6 }
 0x12d   :  { %v174_v63 = vpop.f32.mrb[0].mxu0 }
 0x12e   :  { %v274_v0 = vpop.f32.mrb[0].mxu1  ;;  %v432_v1 = vpop.f32.mrb[1].mxu0  ;;  %v179_v3 = vsel %vm81_vm3, %v174_v63, 2.0  ;;  %v186_v4 = vsel %vm90_vm7, %v174_v63, -2.0 }
 0x12f   :  { %180 = vmin.xlane.f32.xlu0 %v179_v3  ;;  %187 = vmax.xlane.f32.xlu1 %v186_v4  ;;  %v467_v5 = vpop.f32.mrb[1].mxu1  ;;  %v279_v6 = vsel %vm81_vm3, %v274_v0, 2.0  ;;  %v285_v7 = vsel %vm90_vm7, %v274_v0, -2.0 }
 0x133   :  { %280 = vmin.xlane.f32.xlu1 %v279_v6 }
 0x137   :  { %286 = vmax.xlane.f32.xlu1 %v285_v7 }
 0x1bc   :  { %v181_v10 = vpop.xlane.xlu0 %180  ;;  %v188_v11 = vpop.xlane.xlu1 %187 }
 0x1bd   :  { %v182_v12 = vmin.f32 %v178_v2, %v181_v10  ;;  %v189_v13 = vmax.f32 %v185_v9, %v188_v11 }
 0x1bf   :  { %184 = vst.msk [vmem:[#allocation2] sm:$0xff] %vm67_vm1, %v182_v12  ;;  %190 = vst.msk [vmem:[#allocation3] sm:$0xff] %vm67_vm1, %v189_v13 }
 0x1c0   :  { %v281_v15 = vpop.xlane.xlu1 %280 }
 0x1c1   :  { %v282_v16 = vmin.f32 %v278_v14, %v281_v15 }
 0x1c3   :  { %283 = vst.msk [vmem:[#allocation4] sm:$0xff] %vm67_vm1, %v282_v16 }
 0x1c4   :  { %v287_v18 = vpop.xlane.xlu1 %286 }
 0x1c5   :  { %v288_v19 = vmax.f32 %v284_v17, %v287_v18 }
 0x1c6   :  { %v293_v20 = vld [vmem:[#allocation2] sm:$0xff]  ;;  %v316_v21 = vld [vmem:[#allocation3] sm:$0xff] }
 0x1c7   :  { %289 = vst.msk [vmem:[#allocation5] sm:$0xff] %vm67_vm1, %v288_v19  ;;  %v294_v22 = vmul.f32 2.0, %v293_v20  ;;  %v317_v23 = vmul.f32 2.0, %v316_v21 }
 0x1c9   :  { %v295_v24 = vsub.f32 2.0, %v294_v22  ;;  %v318_v25 = vsub.f32 2.0, %v317_v23 }
 0x1ca   :  { %v304_v26 = vld [vmem:[#allocation4] sm:$0xff] }
 0x1cb   :  { %v296_v27 = vmax.f32 %v295_v24, 1e-12  ;;  %v305_v28 = vmul.f32 2.0, %v304_v26  ;;  %v319_v29 = vmax.f32 %v318_v25, 1e-12 }
 0x1cd   :  { %531 = vrsqrt.f32 %v296_v27  ;;  %v306_v30 = vsub.f32 2.0, %v305_v28  ;;  %vm299_vm8 = vcmp.eq.f32.partialorder %v296_v27, inf  ;;  %v302_v43 = vand.u32 2147483648, %v296_v27 }
 0x1ce   :  { %v327_v31 = vld [vmem:[#allocation5] sm:$0xff]  ;;  %533 = vrsqrt.f32 %v319_v29  ;;  %vm322_vm10 = vcmp.eq.f32.partialorder %v319_v29, inf  ;;  %v325_v50 = vand.u32 2147483648, %v319_v29  ;;  %vm301_vm13 = vcmp.eq.f32.partialorder %v296_v27, 0.0 }
 0x1cf   :  { %v328_v32 = vmul.f32 2.0, %v327_v31  ;;  %v307_v33 = vmax.f32 %v306_v30, 1e-12  ;;  %vm324_vm14 = vcmp.eq.f32.partialorder %v319_v29, 0.0 }
 0x1d1   :  { %v329_v34 = vsub.f32 2.0, %v328_v32  ;;  %535 = vrsqrt.f32 %v307_v33  ;;  %vm310_vm9 = vcmp.eq.f32.partialorder %v307_v33, inf  ;;  %v313_v45 = vand.u32 2147483648, %v307_v33 }
 0x1d2   :  { %vm312_vm11 = vcmp.eq.f32.partialorder %v307_v33, 0.0 }
 0x1d3   :  { %v330_v35 = vmax.f32 %v329_v34, 1e-12 }
 0x1d5   :  { %537 = vrsqrt.f32 %v330_v35  ;;  %vm333_vm12 = vcmp.eq.f32.partialorder %v330_v35, inf  ;;  %v336_v51 = vand.u32 2147483648, %v330_v35  ;;  %vm335_vm15 = vcmp.eq.f32.partialorder %v330_v35, 0.0 }
 0x1d7   :  { %v532_v36 = vpop.eup %531 }
 0x1d8   :  { %v534_v37 = vpop.eup %533  ;;  %v298_v39 = vmul.f32 %v532_v36, %v296_v27 }
 0x1d9   :  { %v321_v40 = vmul.f32 %v534_v37, %v319_v29 }
 0x1da   :  { %v300_v46 = vsel %vm299_vm8, %v296_v27, %v298_v39 }
 0x1db   :  { %v536_v38 = vpop.eup %535  ;;  %v323_v47 = vsel %vm322_vm10, %v319_v29, %v321_v40  ;;  %v303_v53 = vsel %vm301_vm13, %v302_v43, %v300_v46 }
 0x1dc   :  { %v309_v41 = vmul.f32 %v536_v38, %v307_v33  ;;  %v326_v54 = vsel %vm324_vm14, %v325_v50, %v323_v47 }
 0x1de   :  { %v311_v44 = vsel %vm310_vm9, %v307_v33, %v309_v41 }
 0x1df   :  { %v538_v42 = vpop.eup %537  ;;  %v314_v49 = vsel %vm312_vm11, %v313_v45, %v311_v44 }
 0x1e0   :  { %v332_v48 = vmul.f32 %v538_v42, %v330_v35  ;;  %v315_v56 = vmax.f32 %v303_v53, %v314_v49 }
 0x1e2   :  { %v334_v52 = vsel %vm333_vm12, %v330_v35, %v332_v48 }
 0x1e3   :  { %v337_v55 = vsel %vm335_vm15, %v336_v51, %v334_v52 }
 0x1e4   :  { %v338_v57 = vmin.f32 %v326_v54, %v337_v55 }
 0x1e6   :  { %v339_v58 = vsub.f32 %v315_v56, %v338_v57 }
 0x1e8   :  { %v340_v59 = vadd.f32 0.3, %v339_v58 }
 0x1ea   :  { %v341_v60 = vmax.f32 %v340_v59, 0.0 }
 0x1ec   :  { %344 = vperm.xlu1 %530, %v341_v60  }
 0x26b   :  { %v345_v61 = vpop.permute.xlu1 %344 }
 0x26c   :  { %347 = vst [vmem:[#allocation12] sm:$0xff] %v345_v61 }
 0x26d   :  { %616 = shalt.err (!%p613_p0)
}
 0x26e   :  { %s617_s17 = scalar_lea.hbm %s777_s6, 128 }
 0x26f   :  { %p618_p1 = scmp.ne.s32.totalorder %s777_s6, %s617_s17  ;;  %p621_p2 = scmp.lt.u32.totalorder %s617_s17, %s777_s6 }
 0x271   :  { %p623_p3 = pnand %p621_p2, %p618_p1 }
 0x273   :  { %626 = shalt.err (!%p623_p3)
}
 0x274   :  { %357 = dma.vmem_to_hbm [thread:$0]  %s355_s4, 128, %s777_s6, [#allocation8]  }
 0x275   :  { %631 = dma.done.wait [#allocation8], 128  }
 0x276   :  { %632 = vsyncadd [#allocation8], 4294967168 }
 0x277   :  { %361 = vsyncpa [#allocation7], 1 }
 0x278   :  { %362 = vsyncpa [#allocation10], 1 }
 0x279   :  { %363 = vsyncpa [#allocation8], 1 }

</bundles_post_ra>
